<compile_context>
chip_gen: v7x
topology: tpu7x:2x2x1
jax: 0.10.0
libtpu: 0.0.40
codegen_flags: <defaults>
</compile_context>

<pallas_src>
import jax
import jax.numpy as jnp
from jax.experimental import pallas as pl
from jax.experimental.pallas import tpu as pltpu


def _round_up(x, m):
    return ((x + m - 1) // m) * m


def _cdiv(a, b):
    return (a + b - 1) // b


def _vmem_cap_bytes():
    """Generation-aware VMEM budget: ~75% of physical capacity (≈96 MiB on
    v5e/v6e, ≈48 MiB on v7x). Conservative fallback if the query fails."""
    try:
        cap = getattr(pltpu.get_tpu_info(), "vmem_capacity_bytes", None)
        if cap:
            return int(0.75 * cap)
    except Exception:
        pass
    return 48 << 20


def _pick_tile_n(n_pad, tile_n_req, min_tiles=1):
    """Largest 128-multiple that divides n_pad and is <= tile_n_req.
    If min_tiles > 1, prefer a choice giving >= min_tiles N tiles (megacore
    sharding on v7x for the decode case); fall back if impossible."""
    q = n_pad // 128
    t_max = max(1, min(tile_n_req, n_pad) // 128)
    candidates = [d for d in range(1, t_max + 1) if q % d == 0]
    preferred = [d for d in candidates if q // d >= min_tiles]
    d = max(preferred) if preferred else max(candidates)
    return d * 128


def _detok_kernel(x_ref, w_ref, b_ref, o_ref):
    # One GEMM tile on the MXU (f32 accumulation) + bias add on the VPU.
    acc = jnp.dot(x_ref[...], w_ref[...], preferred_element_type=jnp.float32)
    o_ref[...] = (acc + b_ref[...]).astype(o_ref.dtype)


def prepare_detokenizer_params(weight, bias, *, compute_dtype=jnp.bfloat16):
    """Repack ConvTranspose1d params ONCE (hoisted out of the forward path).

    weight: (C_in, C_out, K)  -- PyTorch ConvTranspose1d layout.
    bias:   (C_out,)

    Returns (w_flat, b_flat, meta) where
      w_flat[ci, k*C_out + co] = weight[ci, co, k],
    zero-padded along the lane axis only to the next multiple of 128.
    compute_dtype=bf16 halves the dominant weight HBM stream and doubles MXU
    throughput on v6e/v7x (accumulation stays f32 in the kernel); pass f32 for
    bit-exact logits.
    """
    C_in, C_out, K = weight.shape
    N = K * C_out
    N_pad = _round_up(N, 128)  # lane granularity only, not tile_n

    w_flat = jnp.transpose(weight, (0, 2, 1)).reshape(C_in, N)
    b_flat = jnp.tile(bias, K).reshape(1, N)
    w_flat = jnp.pad(w_flat, ((0, 0), (0, N_pad - N))).astype(compute_dtype)
    b_flat = jnp.pad(b_flat, ((0, 0), (0, N_pad - N))).astype(jnp.float32)

    # TODO(synk): add an fp8 (e4m3) weight path for v7x with the per-channel
    # scale folded into the f32 bias/output (v7x MXU has no int8, so do not
    # reuse an int8 quant path here).

    meta = dict(C_in=C_in, C_out=C_out, K=K, N=N, N_pad=N_pad)
    return w_flat, b_flat, meta


def detokenizer_forward(x, w_flat, b_flat, meta, *, tile_m=512, tile_n=2048,
                        out_dtype=jnp.float32):
    """x: (B, T, C_in).  Returns (B, T*K, C_out), matching the PyTorch
    Detokenizer.forward (NLC -> ConvTranspose1d(stride=K, pad=0) -> NLC)."""
    B, T, C_in = x.shape
    assert C_in == meta["C_in"]
    C_out, K, N, N_pad = meta["C_out"], meta["K"], meta["N"], meta["N_pad"]

    in_dtype = w_flat.dtype
    in_itemsize = jnp.dtype(in_dtype).itemsize
    out_itemsize = jnp.dtype(out_dtype).itemsize
    # Sublane granularity: 8 rows for 4-byte, 16 for 2-byte, 32 for 1-byte.
    sub = max(8 * (4 // in_itemsize), 8 * (4 // out_itemsize))

    M = B * T
    # Pick M tiling with minimal padding waste: roughly-equal tiles rounded up
    # to the sublane granularity instead of rounding M up to a full tile_m.
    num_m_tiles = _cdiv(M, max(tile_m, sub))
    tile_m_eff = _round_up(_cdiv(M, num_m_tiles), sub)
    M_pad = num_m_tiles * tile_m_eff
    single_m_tile = num_m_tiles == 1

    # N tiling: a 128-multiple divisor of N_pad. For the single-M-tile
    # (decode) case prefer >=2 N tiles so v7x's two TensorCores each stream a
    # disjoint half of the vocab-sized weight.
    tile_n_eff = _pick_tile_n(N_pad, tile_n, min_tiles=2 if single_m_tile else 1)
    num_n_tiles = N_pad // tile_n_eff

    x_flat = x.reshape(M, C_in)
    if M_pad != M:
        x_flat = jnp.pad(x_flat, ((0, M_pad - M), (0, 0)))
    x_flat = x_flat.astype(in_dtype)

    # VMEM budget: double-buffered x / w / bias / out tiles, plus headroom.
    # Never clamp below the step budget; ceiling is generation-aware.
    step_bytes = 2 * (tile_m_eff * C_in * in_itemsize        # x tile
                      + C_in * tile_n_eff * in_itemsize      # w tile
                      + tile_n_eff * 4                       # bias tile (f32)
                      + tile_m_eff * tile_n_eff * out_itemsize)  # out tile
    vmem_limit = int(max(min(step_bytes + (4 << 20), _vmem_cap_bytes()),
                         step_bytes + (1 << 20), 16 << 20))

    if single_m_tile:
        # 1-D grid over N only: the single x tile stays resident (DMA'd once);
        # purely weight-bandwidth bound in this regime.
        grid = (num_n_tiles,)
        in_specs = [
            pl.BlockSpec((tile_m_eff, C_in), lambda j: (0, 0)),      # x
            pl.BlockSpec((C_in, tile_n_eff), lambda j: (0, j)),      # w
            pl.BlockSpec((1, tile_n_eff), lambda j: (0, j)),         # bias
        ]
        out_spec = pl.BlockSpec((tile_m_eff, tile_n_eff), lambda j: (0, j))
        dims = ("parallel",)
    else:
        # 2-D grid: N OUTER, M inner (fastest). The weight/bias block index is
        # constant across the inner loop, so the vocab-sized weight is read
        # from HBM exactly once; only the small (tile_m, C_in) x tile streams.
        grid = (num_n_tiles, num_m_tiles)
        in_specs = [
            pl.BlockSpec((tile_m_eff, C_in), lambda j, i: (i, 0)),   # x
            pl.BlockSpec((C_in, tile_n_eff), lambda j, i: (0, j)),   # w
            pl.BlockSpec((1, tile_n_eff), lambda j, i: (0, j)),      # bias
        ]
        out_spec = pl.BlockSpec((tile_m_eff, tile_n_eff), lambda j, i: (i, j))
        dims = ("parallel", "parallel")

    out_flat = pl.pallas_call(
        _detok_kernel,
        out_shape=jax.ShapeDtypeStruct((M_pad, N_pad), out_dtype),
        grid_spec=pltpu.PrefetchScalarGridSpec(
            num_scalar_prefetch=0,
            grid=grid,
            in_specs=in_specs,
            out_specs=out_spec,
        ),
        compiler_params=pltpu.CompilerParams(
            dimension_semantics=dims,
            vmem_limit_bytes=vmem_limit),
    )(x_flat, w_flat, b_flat)

    # Slice off M / N padding, then view as (B, T*K, C_out).
    out = out_flat[:M, :N]
    return out.reshape(B, T, K, C_out).reshape(B, T * K, C_out)


def detokenizer_ref(x, weight, bias):
    """Pure-JAX reference of ConvTranspose1d(stride=K, padding=0) in NLC."""
    y = jnp.einsum("btc,cok->btko", x, weight) + bias  # (B, T, K, C_out)
    B, T, K, Co = y.shape
    return y.reshape(B, T * K, Co)


if __name__ == "__main__":
    key = jax.random.PRNGKey(0)

    # ---------------------------------------------------------------------
    # Test 1: f32 compute, tiny "decode"-style shapes.  Exercises the 1-D
    # (single M tile) grid path plus M-padding (T=7) and N-padding (C_out=17).
    # ---------------------------------------------------------------------
    B, T = 2, 7
    C_in, C_out, K = 32, 17, 4
    kx, kw, kb, kx2, kw2, kb2 = jax.random.split(key, 6)

    # Deterministic init mimicking PyTorch's uniform(-bound, bound),
    # bound = 1/sqrt(in_channels * kernel_size).
    bound = 1.0 / float(C_in * K) ** 0.5
    x = jax.random.normal(kx, (B, T, C_in), dtype=jnp.float32)
    weight = jax.random.uniform(kw, (C_in, C_out, K), dtype=jnp.float32,
                                minval=-bound, maxval=bound)
    bias = jax.random.uniform(kb, (C_out,), dtype=jnp.float32,
                              minval=-bound, maxval=bound)

    w32, b32, meta32 = prepare_detokenizer_params(
        weight, bias, compute_dtype=jnp.float32)
    fwd32 = jax.jit(lambda xx: detokenizer_forward(xx, w32, b32, meta32))
    out = jax.block_until_ready(fwd32(x))

    ref = detokenizer_ref(x, weight, bias)
    assert out.shape == (B, T * K, C_out), out.shape
    assert jnp.allclose(out, ref, atol=1e-5, rtol=1e-5), (
        float(jnp.max(jnp.abs(out - ref))))

    # ---------------------------------------------------------------------
    # Test 2: bf16 weights/activations + bf16 logits.  Exercises the 2-D grid
    # (N outer, M inner) with multiple M tiles and multiple N tiles.
    # ---------------------------------------------------------------------
    B2, T2 = 2, 150
    C_in2, C_out2, K2 = 64, 257, 4
    bound2 = 1.0 / float(C_in2 * K2) ** 0.5
    x2 = jax.random.normal(kx2, (B2, T2, C_in2), dtype=jnp.float32)
    weight2 = jax.random.uniform(kw2, (C_in2, C_out2, K2), dtype=jnp.float32,
                                 minval=-bound2, maxval=bound2)
    bias2 = jax.random.uniform(kb2, (C_out2,), dtype=jnp.float32,
                               minval=-bound2, maxval=bound2)

    wbf, bbf, metabf = prepare_detokenizer_params(
        weight2, bias2, compute_dtype=jnp.bfloat16)
    fwd_bf = jax.jit(lambda xx: detokenizer_forward(
        xx, wbf, bbf, metabf, tile_m=128, tile_n=512,
        out_dtype=jnp.bfloat16))
    out2 = jax.block_until_ready(fwd_bf(x2))

    ref2 = detokenizer_ref(x2, weight2, bias2)
    assert out2.shape == (B2, T2 * K2, C_out2), out2.shape
    assert jnp.allclose(out2.astype(jnp.float32), ref2, atol=3e-2), (
        float(jnp.max(jnp.abs(out2.astype(jnp.float32) - ref2))))

    print("KERNEL_OK")
</pallas_src>

<mosaic_0001>
module attributes {stable_mosaic.version = 11 : i64} {
  func.func @_detok_kernel(%arg0: i32, %arg1: memref<16x32xf32, #tpu.memory_space<vmem>>, %arg2: memref<32x128xf32, #tpu.memory_space<vmem>>, %arg3: memref<1x128xf32, #tpu.memory_space<vmem>>, %arg4: memref<16x128xf32, #tpu.memory_space<vmem>>) attributes {dimension_semantics = [#tpu.dimension_semantics<parallel>], iteration_bounds = array<i64: 1>, scalar_prefetch = 0 : i64, scratch_operands = 0 : i64, tpu.core_type = #tpu.core_type<tc>, window_params = [{pipeline_mode = #tpu.pipeline_mode<synchronous>, transform_indices = @transform_0, window_bounds = array<i64: 16, 32>}, {transform_indices = @transform_1, window_bounds = array<i64: 32, 128>}, {transform_indices = @transform_2, window_bounds = array<i64: 1, 128>}, {transform_indices = @transform_3, window_bounds = array<i64: 16, 128>}]} {
    %c0 = arith.constant 0 : index
    %c0_0 = arith.constant 0 : index
    %0 = vector.load %arg1[%c0, %c0_0] : memref<16x32xf32, #tpu.memory_space<vmem>>, vector<16x32xf32>
    %c0_1 = arith.constant 0 : index
    %c0_2 = arith.constant 0 : index
    %1 = vector.load %arg2[%c0_1, %c0_2] : memref<32x128xf32, #tpu.memory_space<vmem>>, vector<32x128xf32>
    %cst = arith.constant dense<0.000000e+00> : vector<16x128xf32>
    %2 = tpu.matmul %0, %1, %cst {dimension_numbers = #tpu.dot_dimension_numbers<[1], [0], [0], [1], [0, 0, 1, 1], [], []>} : vector<16x32xf32>, vector<32x128xf32>, vector<16x128xf32> -> vector<16x128xf32>
    %c0_3 = arith.constant 0 : index
    %c0_4 = arith.constant 0 : index
    %3 = vector.load %arg3[%c0_3, %c0_4] : memref<1x128xf32, #tpu.memory_space<vmem>>, vector<1x128xf32>
    %4 = vector.broadcast %3 : vector<1x128xf32> to vector<16x128xf32>
    %5 = arith.addf %2, %4 : vector<16x128xf32>
    %c0_5 = arith.constant 0 : index
    %c0_6 = arith.constant 0 : index
    %6 = vector.load %arg4[%c0_5, %c0_6] : memref<16x128xf32, #tpu.memory_space<vmem>>, vector<16x128xf32>
    tpu.vector_store %arg4[%c0_5, %c0_6], %5 {strides = array<i32>} : memref<16x128xf32, #tpu.memory_space<vmem>>, vector<16x128xf32>,
    return
  }
  func.func @transform_0(%arg0: i32) -> (i32, i32) {
    %c0_i32 = arith.constant 0 : i32
    %c0_i32_0 = arith.constant 0 : i32
    %c0_i32_1 = arith.constant 0 : i32
    return %c0_i32, %c0_i32_0 : i32, i32
  }
  func.func @transform_1(%arg0: i32) -> (i32, i32) {
    %c0_i32 = arith.constant 0 : i32
    %c0_i32_0 = arith.constant 0 : i32
    return %c0_i32, %arg0 : i32, i32
  }
  func.func @transform_2(%arg0: i32) -> (i32, i32) {
    %c0_i32 = arith.constant 0 : i32
    %c0_i32_0 = arith.constant 0 : i32
    return %c0_i32, %arg0 : i32, i32
  }
  func.func @transform_3(%arg0: i32) -> (i32, i32) {
    %c0_i32 = arith.constant 0 : i32
    %c0_i32_0 = arith.constant 0 : i32
    return %c0_i32, %arg0 : i32, i32
  }
}

</mosaic_0001>

<bundles_post_ra>
// kernel: _lambda_.1
= control target key start
LH: loop header
LB: loop body
LE: loop exit
PB: predicated region body
PF: predicated region fallthrough
CT: control target
= control target key end

     0   :  { %vm27_vm0 = vcmask 261120   ;;  %s190_s1 = inlined_call_operand.vmem [shape: f32[32,128], index: 1, kind: input, shape index: {}]   ;;  %s191_s0 = inlined_call_operand.vmem [shape: f32[16,32], index: 0, kind: input, shape index: {}]   ;;  %s192_s2 = inlined_call_operand.vmem [shape: f32[1,128], index: 2, kind: input, shape index: {}]   ;;  %s193_s3 = inlined_call_operand.vmem [shape: f32[16,128], index: 3, kind: output, shape index: {}]  }
   0x1   :  { %v16_v0 = vld [vmem:[%s190_s1] sm:$0xff]  ;;  %v17_v1 = vld [vmem:[%s190_s1 + $0x8] sm:$0xff]  ;;  %v18_v2 = vld [vmem:[%s190_s1 + $0x10] sm:$0xff] }
   0x2   :  { %v135_v3 = vpack.c.bf16 %v17_v1, %v16_v0  ;;  %v19_v4 = vld [vmem:[%s190_s1 + $0x18] sm:$0xff]  ;;  %v14_v5 = vld [vmem:[%s191_s0] sm:$0xff]  ;;  %v15_v7 = vld [vmem:[%s191_s0 + $0x8] sm:$0xff] }
   0x3   :  { %v139_v6 = vpack.c.bf16 %v19_v4, %v18_v2  ;;  %132 = vmatprep.mubr.msk.f32.mxu0 %vm27_vm0, %v14_v5  ;;  %v115_v8 = vld [vmem:[%s192_s2] ss:$0 sm:$0xff] }
   0x4   :  { %136 = vmatprep.subr.bf16.mxu0 %v135_v3 }
   0x5   :  { %138 = vmatpush3.bf16.msra.mxu0 %v135_v3 }
   0x6   :  { %140 = vmatprep.subr.bf16.mxu0 %v139_v6 }
   0x9   :  { %142 = vmatpush3.bf16.msra.mxu0 %v139_v6 }
   0xc   :  { %133 = vmatmul.mubr.msk.f32.vlgmr.msra.gmra.mrb[0].mxu0 %vm27_vm0, %v15_v7 }
  0xdf   :  { %v134_v9 = vpop.f32.mrb[0].mxu0 }
  0xe0   :  { %v106_v10 = vadd.f32 %v134_v9, %v115_v8  ;;  %v100_v11 = vpop.f32.mrb[1].mxu0 }
  0xe1   :  { %v101_v12 = vadd.f32 %v115_v8, %v100_v11 }
  0xe2   :  { %110 = vst [vmem:[%s193_s3 + $0x8] sm:$0xff] %v106_v10 }
  0xe3   :  { %109 = vst [vmem:[%s193_s3] sm:$0xff] %v101_v12 }

</bundles_post_ra>
